<compile_context>
chip_gen: v7x
topology: tpu7x:2x2x1
jax: 0.10.0
libtpu: 0.0.40
codegen_flags: <defaults>
</compile_context>

<pallas_src>
import functools

import jax
import jax.numpy as jnp
from jax import lax
from jax.experimental import pallas as pl
from jax.experimental.pallas import tpu as pltpu


def _round_up(v, m):
    return -(-v // m) * m


def _miou_kernel(x_ref, t_ref, inter_ref, union_ref,
                 inter_acc, psum_acc, cnt_acc, ones_ref, *,
                 one_hot, masked, hw_valid, hw_tile, chunk, n_half, unroll):
    # x_ref:    (N, C, hw_tile) logits tile
    # t_ref:    (N, C, hw_tile) one-hot tile   (one_hot=True)
    #           (N, 1, hw_tile) int32 labels   (one_hot=False; -1 on padded lanes)
    # inter_ref / union_ref: (1, N, C) partials for this grid half
    # *_acc:    (N, C, 128) lane-replicated f32 accumulators (VMEM scratch)
    # ones_ref: (chunk, 128) all-ones MXU reduction RHS (VMEM scratch)
    h = pl.program_id(0)
    k = pl.program_id(1)

    @pl.when(k == 0)
    def _():
        inter_acc[...] = jnp.zeros_like(inter_acc)
        psum_acc[...] = jnp.zeros_like(psum_acc)
        cnt_acc[...] = jnp.zeros_like(cnt_acc)
        ones_ref[...] = jnp.ones((chunk, 128), jnp.float32)

    N = x_ref.shape[0]
    C = x_ref.shape[1]
    ones = ones_ref[...]                                     # (chunk, 128)

    # grid-invariant constants, hoisted out of the chunk loop
    if not one_hot:
        cls = lax.broadcasted_iota(jnp.int32, (1, C, chunk), 1)
    if masked and one_hot:
        lane = lax.broadcasted_iota(jnp.int32, (1, 1, chunk), 2)
        tile_base = (h * n_half + k) * hw_tile

    def _process(off):
        x = x_ref[:, :, pl.ds(off, chunk)].astype(jnp.float32)   # (N, C, S)
        # softmax over the class (sublane) axis
        m = jnp.max(x, axis=1, keepdims=True)
        e = jnp.exp(x - m)                                        # EUP
        s = jnp.sum(e, axis=1, keepdims=True)
        r = pl.reciprocal(s, approx=True)                         # EUP
        r = r * (2.0 - s * r)                                     # Newton -> ~f32
        p = e * r                                                 # (N, C, S)

        if one_hot:
            t = t_ref[:, :, pl.ds(off, chunk)].astype(jnp.float32)
            pm = p * t
            cnt = t
            if masked:
                # padded lanes have zero logits -> softmax contributes 1/C to
                # sum(p); mask them out of psum only (pm/cnt already zero).
                valid = (tile_base + off + lane) < hw_valid       # (1, 1, S)
                p_v = jnp.where(valid, p, 0.0)
            else:
                p_v = p
        else:
            lbl = t_ref[:, :, pl.ds(off, chunk)]                  # (N, 1, S) int32
            eq = lbl == cls                                       # (N, C, S)
            pm = jnp.where(eq, p, 0.0)                            # compare+select
            cnt = jnp.where(eq, 1.0, 0.0)
            if masked:
                p_v = jnp.where(lbl >= 0, p, 0.0)                 # padded lanes = -1
            else:
                p_v = p

        # Lane reduction on the otherwise-idle MXU: (C, S) @ (S, 128) all-ones
        # replicates sum_S(...) across the 128 lanes of the accumulator.
        for n in range(N):
            inter_acc[n] += jnp.dot(pm[n], ones,
                                    preferred_element_type=jnp.float32)
            psum_acc[n] += jnp.dot(p_v[n], ones,
                                   preferred_element_type=jnp.float32)
            cnt_acc[n] += jnp.dot(cnt[n], ones,
                                  preferred_element_type=jnp.float32)

    n_chunks = hw_tile // chunk
    if n_chunks == 1:
        _process(0)
    else:
        def body(j, carry):
            _process(pl.multiple_of(j * chunk, chunk))
            return carry
        if unroll:
            lax.fori_loop(0, n_chunks, body, 0, unroll=True)
        else:
            lax.fori_loop(0, n_chunks, body, 0)

    # tiny finalize: one cross-lane op + one small store, last reduction step only
    @pl.when(k == pl.num_programs(1) - 1)
    def _():
        # all 128 lanes of each accumulator hold the identical sum -> max is exact
        inter = jnp.max(inter_acc[...], axis=2)                   # (N, C)
        psum = jnp.max(psum_acc[...], axis=2)
        cnt = jnp.max(cnt_acc[...], axis=2)
        inter_ref[0] = inter
        union_ref[0] = psum + cnt - inter                         # sum(p + t - p*t)


def _plan(HW, N, C, x_itemsize, one_hot, t_itemsize):
    """Choose (hw_tile, grid split, chunk, vmem limit) from a *sublane-padded*
    VMEM model: logits block = N * roundup(C,8) * tile bytes, label block pads
    1 -> 8 sublanes, both double-buffered."""
    c_pad = _round_up(C, 8)
    x_lane = N * c_pad * x_itemsize
    t_lane = N * (c_pad if one_hot else 8) * t_itemsize
    per_lane = 2 * (x_lane + t_lane)                 # x2: double buffering
    cap = (16 << 20) // per_lane                     # <=16 MiB of input blocks
    cap = max((cap // 128) * 128, 128)
    cap = min(cap, 64 * 1024)

    # Prefer a 128-multiple divisor of HW (no host-side pad copy); among those
    # prefer an even tile count so the reduction splits across 2 TCs (v7x).
    best = None
    best_even = None
    d = min(cap, (HW // 128) * 128)
    while d >= 128:
        if HW % d == 0:
            if best is None:
                best = d
            if (HW // d) % 2 == 0:
                best_even = d
                break
        d -= 128
    if best_even is not None and best_even * 8 >= best:
        tile = best_even
    elif best is not None:
        tile = best
    else:
        # rare fallback: HW has no 128-multiple divisor within budget -> pad
        tile = min(cap, _round_up(HW, 128))

    hw_pad = _round_up(HW, tile)
    n_tiles = hw_pad // tile
    if hw_pad > HW and n_tiles > 1 and n_tiles % 2 == 1:
        n_tiles += 1                                  # keep the 2-way split
        hw_pad += tile
    n_par = 2 if (n_tiles >= 2 and n_tiles % 2 == 0) else 1
    n_half = n_tiles // n_par

    # sub-chunk width: intermediates (N, c_pad, chunk) f32 stay within ~8 vregs
    chunk = 128
    for cand in (1024, 512, 256):
        if tile % cand == 0 and N * c_pad * cand * 4 <= (32 << 10):
            chunk = cand
            break
    n_chunks = tile // chunk
    unroll = n_chunks <= 8

    # explicit scoped-VMEM limit from the corrected footprint
    x_blk = N * c_pad * tile * x_itemsize
    t_blk = N * (c_pad if one_hot else 8) * tile * t_itemsize
    fixed = 3 * N * c_pad * 128 * 4 + chunk * 128 * 4
    est = 2 * (x_blk + t_blk) + fixed + (4 << 20)     # +margin for temporaries
    vmem_limit = int(min(max(est * 5 // 4, 24 << 20), 48 << 20))

    return dict(tile=tile, hw_pad=hw_pad, n_par=n_par, n_half=n_half,
                chunk=chunk, unroll=unroll, vmem_limit=vmem_limit)


def _miou_loss_impl(inputs, target, *, one_hot):
    N, C, H, W = inputs.shape
    HW = H * W
    x = inputs.reshape(N, C, HW)
    if one_hot:
        t = target.reshape(N, C, HW)
        t_itemsize = t.dtype.itemsize
    else:
        t = target.reshape(N, 1, HW).astype(jnp.int32)
        t_itemsize = 4

    plan = _plan(HW, N, C, x.dtype.itemsize, one_hot, t_itemsize)
    tile, hw_pad = plan["tile"], plan["hw_pad"]
    n_par, n_half = plan["n_par"], plan["n_half"]
    chunk, unroll, vmem_limit = plan["chunk"], plan["unroll"], plan["vmem_limit"]
    masked = hw_pad > HW

    if masked:
        pad = hw_pad - HW
        x = jnp.pad(x, ((0, 0), (0, 0), (0, pad)))
        if one_hot:
            t = jnp.pad(t, ((0, 0), (0, 0), (0, pad)))            # zeros
        else:
            t = jnp.pad(t, ((0, 0), (0, 0), (0, pad)), constant_values=-1)

    kernel = functools.partial(
        _miou_kernel, one_hot=one_hot, masked=masked, hw_valid=HW,
        hw_tile=tile, chunk=chunk, n_half=n_half, unroll=unroll)

    t_rows = C if one_hot else 1
    inter_p, union_p = pl.pallas_call(
        kernel,
        out_shape=(
            jax.ShapeDtypeStruct((n_par, N, C), jnp.float32),
            jax.ShapeDtypeStruct((n_par, N, C), jnp.float32),
        ),
        grid_spec=pltpu.PrefetchScalarGridSpec(
            num_scalar_prefetch=0,
            grid=(n_par, n_half),
            in_specs=[
                pl.BlockSpec((N, C, tile),
                             lambda h, k, nh=n_half: (0, 0, h * nh + k)),
                pl.BlockSpec((N, t_rows, tile),
                             lambda h, k, nh=n_half: (0, 0, h * nh + k)),
            ],
            out_specs=[
                pl.BlockSpec((1, N, C), lambda h, k: (h, 0, 0)),
                pl.BlockSpec((1, N, C), lambda h, k: (h, 0, 0)),
            ],
            scratch_shapes=[
                pltpu.VMEM((N, C, 128), jnp.float32),
                pltpu.VMEM((N, C, 128), jnp.float32),
                pltpu.VMEM((N, C, 128), jnp.float32),
                pltpu.VMEM((chunk, 128), jnp.float32),
            ]),
        compiler_params=pltpu.CompilerParams(
            dimension_semantics=("parallel", "arbitrary"),
            vmem_limit_bytes=vmem_limit),
    )(x, t)

    # tiny epilogue (n_par*N*C elements): combine halves, IoU ratio, global mean
    inter = jnp.sum(inter_p, axis=0)
    union = jnp.sum(union_p, axis=0)
    return jnp.mean(inter / union)


def miou_loss(inputs, target_one_hot):
    """Drop-in for mIoULoss.forward(inputs, target_oneHot).
    Streams the dense one-hot target directly into the kernel (no separate
    argmax pass), so it matches the PyTorch elementwise formula exactly, also
    for soft targets. Returns +mean(inter/union), same as the module."""
    return _miou_loss_impl(inputs, target_one_hot, one_hot=True)


def miou_loss_from_labels(inputs, labels):
    """Fast path when integer class labels are available upstream: streams
    4 B/pixel of targets instead of the 4*C B/pixel dense one-hot."""
    return _miou_loss_impl(inputs, labels, one_hot=False)


def _miou_loss_ref(inputs, target_one_hot):
    # pure-JAX reference for sanity checking
    p = jax.nn.softmax(inputs, axis=1)
    t = target_one_hot.astype(jnp.float32)
    N, C = inputs.shape[0], inputs.shape[1]
    inter = (p * t).reshape(N, C, -1).sum(-1)
    union = (p + t - p * t).reshape(N, C, -1).sum(-1)
    return jnp.mean(inter / union)


if __name__ == "__main__":
    key = jax.random.PRNGKey(0)
    k_x, k_lbl = jax.random.split(key)

    N, C, H, W = 2, 4, 16, 16  # batch=2, n_classes=4, spatial=16x16
    inputs = jax.random.normal(k_x, (N, C, H, W), dtype=jnp.float32)
    labels = jax.random.randint(k_lbl, (N, H, W), 0, C)
    # one-hot target in NCHW (what the PyTorch module receives)
    target_one_hot = jnp.transpose(
        jax.nn.one_hot(labels, C, dtype=jnp.float32), (0, 3, 1, 2)
    )

    loss = miou_loss(inputs, target_one_hot)
    jax.block_until_ready(loss)

    ref = _miou_loss_ref(inputs, target_one_hot)
    assert jnp.allclose(loss, ref, atol=2e-5, rtol=2e-5), (loss, ref)

    # also exercise the integer-label fast path
    loss2 = miou_loss_from_labels(inputs, labels)
    jax.block_until_ready(loss2)
    assert jnp.allclose(loss2, ref, atol=2e-5, rtol=2e-5), (loss2, ref)

    print("KERNEL_OK")
</pallas_src>

<mosaic_0001>
module attributes {stable_mosaic.version = 11 : i64} {
  func.func @_miou_kernel(%arg0: i32, %arg1: i32, %arg2: memref<2x4x128xf32, #tpu.memory_space<vmem>>, %arg3: memref<2x4x128xf32, #tpu.memory_space<vmem>>, %arg4: memref<1x2x4xf32, #tpu.memory_space<vmem>>, %arg5: memref<1x2x4xf32, #tpu.memory_space<vmem>>, %arg6: memref<2x4x128xf32, #tpu.memory_space<vmem>>, %arg7: memref<2x4x128xf32, #tpu.memory_space<vmem>>, %arg8: memref<2x4x128xf32, #tpu.memory_space<vmem>>, %arg9: memref<128x128xf32, #tpu.memory_space<vmem>>) attributes {dimension_semantics = [#tpu.dimension_semantics<parallel>, #tpu.dimension_semantics<arbitrary>], iteration_bounds = array<i64: 2, 1>, scalar_prefetch = 0 : i64, scratch_operands = 4 : i64, tpu.core_type = #tpu.core_type<tc>, window_params = [{transform_indices = @transform_0, window_bounds = array<i64: 2, 4, 128>}, {transform_indices = @transform_1, window_bounds = array<i64: 2, 4, 128>}, {transform_indices = @transform_2, window_bounds = array<i64: 1, 2, 4>}, {transform_indices = @transform_3, window_bounds = array<i64: 1, 2, 4>}]} {
    %c0_i32 = arith.constant 0 : i32
    %0 = arith.cmpi eq, %arg1, %c0_i32 : i32
    %1 = arith.extui %0 : i1 to i32
    %c0_i32_0 = arith.constant 0 : i32
    %2 = arith.cmpi ne, %1, %c0_i32_0 : i32
    scf.if %2 {
      %cst_53 = arith.constant 0.000000e+00 : f32
      %78 = vector.broadcast %cst_53 : f32 to vector<2x4x128xf32>
      %c0_54 = arith.constant 0 : index
      %c0_55 = arith.constant 0 : index
      %c0_56 = arith.constant 0 : index
      %79 = vector.load %arg6[%c0_54, %c0_55, %c0_56] : memref<2x4x128xf32, #tpu.memory_space<vmem>>, vector<2x4x128xf32>
      tpu.vector_store %arg6[%c0_54, %c0_55, %c0_56], %78 {strides = array<i32>} : memref<2x4x128xf32, #tpu.memory_space<vmem>>, vector<2x4x128xf32>,
      %cst_57 = arith.constant 0.000000e+00 : f32
      %80 = vector.broadcast %cst_57 : f32 to vector<2x4x128xf32>
      %c0_58 = arith.constant 0 : index
      %c0_59 = arith.constant 0 : index
      %c0_60 = arith.constant 0 : index
      %81 = vector.load %arg7[%c0_58, %c0_59, %c0_60] : memref<2x4x128xf32, #tpu.memory_space<vmem>>, vector<2x4x128xf32>
      tpu.vector_store %arg7[%c0_58, %c0_59, %c0_60], %80 {strides = array<i32>} : memref<2x4x128xf32, #tpu.memory_space<vmem>>, vector<2x4x128xf32>,
      %cst_61 = arith.constant 0.000000e+00 : f32
      %82 = vector.broadcast %cst_61 : f32 to vector<2x4x128xf32>
      %c0_62 = arith.constant 0 : index
      %c0_63 = arith.constant 0 : index
      %c0_64 = arith.constant 0 : index
      %83 = vector.load %arg8[%c0_62, %c0_63, %c0_64] : memref<2x4x128xf32, #tpu.memory_space<vmem>>, vector<2x4x128xf32>
      tpu.vector_store %arg8[%c0_62, %c0_63, %c0_64], %82 {strides = array<i32>} : memref<2x4x128xf32, #tpu.memory_space<vmem>>, vector<2x4x128xf32>,
      %cst_65 = arith.constant 1.000000e+00 : f32
      %84 = vector.broadcast %cst_65 : f32 to vector<128x128xf32>
      %c0_66 = arith.constant 0 : index
      %c0_67 = arith.constant 0 : index
      %85 = vector.load %arg9[%c0_66, %c0_67] : memref<128x128xf32, #tpu.memory_space<vmem>>, vector<128x128xf32>
      tpu.vector_store %arg9[%c0_66, %c0_67], %84 {strides = array<i32>} : memref<128x128xf32, #tpu.memory_space<vmem>>, vector<128x128xf32>,
    } else {
    }
    %c0 = arith.constant 0 : index
    %c0_1 = arith.constant 0 : index
    %3 = vector.load %arg9[%c0, %c0_1] : memref<128x128xf32, #tpu.memory_space<vmem>>, vector<128x128xf32>
    %c0_2 = arith.constant 0 : index
    %c0_3 = arith.constant 0 : index
    %c0_4 = arith.constant 0 : index
    %4 = vector.load %arg2[%c0_2, %c0_3, %c0_4] : memref<2x4x128xf32, #tpu.memory_space<vmem>>, vector<2x4x128xf32>
    %cst = arith.constant dense<0xFF800000> : vector<2x128xf32>
    %5 = vector.multi_reduction <maximumf>, %4, %cst [1] : vector<2x4x128xf32> to vector<2x128xf32>
    %6 = vector.shape_cast %5 : vector<2x128xf32> to vector<2x1x128xf32>
    %7 = vector.broadcast %6 : vector<2x1x128xf32> to vector<2x4x128xf32>
    %8 = arith.subf %4, %7 : vector<2x4x128xf32>
    %9 = math.exp %8 : vector<2x4x128xf32>
    %cst_5 = arith.constant dense<0.000000e+00> : vector<2x128xf32>
    %10 = vector.multi_reduction <add>, %9, %cst_5 [1] : vector<2x4x128xf32> to vector<2x128xf32>
    %11 = vector.shape_cast %10 : vector<2x128xf32> to vector<2x1x128xf32>
    %12 = tpu.reciprocal %11 {approx = true} : vector<2x1x128xf32> -> vector<2x1x128xf32>
    %13 = arith.mulf %11, %12 : vector<2x1x128xf32>
    %cst_6 = arith.constant 2.000000e+00 : f32
    %14 = vector.broadcast %cst_6 : f32 to vector<2x1x128xf32>
    %15 = arith.subf %14, %13 : vector<2x1x128xf32>
    %16 = arith.mulf %12, %15 : vector<2x1x128xf32>
    %17 = vector.broadcast %16 : vector<2x1x128xf32> to vector<2x4x128xf32>
    %18 = arith.mulf %9, %17 : vector<2x4x128xf32>
    %c0_7 = arith.constant 0 : index
    %c0_8 = arith.constant 0 : index
    %c0_9 = arith.constant 0 : index
    %19 = vector.load %arg3[%c0_7, %c0_8, %c0_9] : memref<2x4x128xf32, #tpu.memory_space<vmem>>, vector<2x4x128xf32>
    %20 = arith.mulf %18, %19 : vector<2x4x128xf32>
    %c0_10 = arith.constant 0 : index
    %c0_11 = arith.constant 0 : index
    %c0_12 = arith.constant 0 : index
    %21 = vector.load %arg6[%c0_10, %c0_11, %c0_12] : memref<2x4x128xf32, #tpu.memory_space<vmem>>, vector<1x4x128xf32>
    %22 = vector.shape_cast %21 : vector<1x4x128xf32> to vector<4x128xf32>
    %23 = vector.extract_strided_slice %20 {offsets = [0, 0, 0], sizes = [1, 4, 128], strides = [1, 1, 1]} : vector<2x4x128xf32> to vector<1x4x128xf32>
    %24 = vector.shape_cast %23 : vector<1x4x128xf32> to vector<4x128xf32>
    %cst_13 = arith.constant dense<0.000000e+00> : vector<4x128xf32>
    %25 = tpu.matmul %24, %3, %cst_13 {dimension_numbers = #tpu.dot_dimension_numbers<[1], [0], [0], [1], [0, 0, 1, 1], [], []>} : vector<4x128xf32>, vector<128x128xf32>, vector<4x128xf32> -> vector<4x128xf32>
    %26 = arith.addf %22, %25 : vector<4x128xf32>
    %c0_14 = arith.constant 0 : index
    %c0_15 = arith.constant 0 : index
    %c0_16 = arith.constant 0 : index
    %27 = vector.load %arg6[%c0_14, %c0_15, %c0_16] : memref<2x4x128xf32, #tpu.memory_space<vmem>>, vector<1x4x128xf32>
    %28 = vector.shape_cast %27 : vector<1x4x128xf32> to vector<4x128xf32>
    %29 = vector.shape_cast %26 : vector<4x128xf32> to vector<1x4x128xf32>
    tpu.vector_store %arg6[%c0_14, %c0_15, %c0_16], %29 {strides = array<i32>} : memref<2x4x128xf32, #tpu.memory_space<vmem>>, vector<1x4x128xf32>,
    %c0_17 = arith.constant 0 : index
    %c0_18 = arith.constant 0 : index
    %c0_19 = arith.constant 0 : index
    %30 = vector.load %arg7[%c0_17, %c0_18, %c0_19] : memref<2x4x128xf32, #tpu.memory_space<vmem>>, vector<1x4x128xf32>
    %31 = vector.shape_cast %30 : vector<1x4x128xf32> to vector<4x128xf32>
    %32 = vector.extract_strided_slice %18 {offsets = [0, 0, 0], sizes = [1, 4, 128], strides = [1, 1, 1]} : vector<2x4x128xf32> to vector<1x4x128xf32>
    %33 = vector.shape_cast %32 : vector<1x4x128xf32> to vector<4x128xf32>
    %cst_20 = arith.constant dense<0.000000e+00> : vector<4x128xf32>
    %34 = tpu.matmul %33, %3, %cst_20 {dimension_numbers = #tpu.dot_dimension_numbers<[1], [0], [0], [1], [0, 0, 1, 1], [], []>} : vector<4x128xf32>, vector<128x128xf32>, vector<4x128xf32> -> vector<4x128xf32>
    %35 = arith.addf %31, %34 : vector<4x128xf32>
    %c0_21 = arith.constant 0 : index
    %c0_22 = arith.constant 0 : index
    %c0_23 = arith.constant 0 : index
    %36 = vector.load %arg7[%c0_21, %c0_22, %c0_23] : memref<2x4x128xf32, #tpu.memory_space<vmem>>, vector<1x4x128xf32>
    %37 = vector.shape_cast %36 : vector<1x4x128xf32> to vector<4x128xf32>
    %38 = vector.shape_cast %35 : vector<4x128xf32> to vector<1x4x128xf32>
    tpu.vector_store %arg7[%c0_21, %c0_22, %c0_23], %38 {strides = array<i32>} : memref<2x4x128xf32, #tpu.memory_space<vmem>>, vector<1x4x128xf32>,
    %c0_24 = arith.constant 0 : index
    %c0_25 = arith.constant 0 : index
    %c0_26 = arith.constant 0 : index
    %39 = vector.load %arg8[%c0_24, %c0_25, %c0_26] : memref<2x4x128xf32, #tpu.memory_space<vmem>>, vector<1x4x128xf32>
    %40 = vector.shape_cast %39 : vector<1x4x128xf32> to vector<4x128xf32>
    %41 = vector.extract_strided_slice %19 {offsets = [0, 0, 0], sizes = [1, 4, 128], strides = [1, 1, 1]} : vector<2x4x128xf32> to vector<1x4x128xf32>
    %42 = vector.shape_cast %41 : vector<1x4x128xf32> to vector<4x128xf32>
    %cst_27 = arith.constant dense<0.000000e+00> : vector<4x128xf32>
    %43 = tpu.matmul %42, %3, %cst_27 {dimension_numbers = #tpu.dot_dimension_numbers<[1], [0], [0], [1], [0, 0, 1, 1], [], []>} : vector<4x128xf32>, vector<128x128xf32>, vector<4x128xf32> -> vector<4x128xf32>
    %44 = arith.addf %40, %43 : vector<4x128xf32>
    %c0_28 = arith.constant 0 : index
    %c0_29 = arith.constant 0 : index
    %c0_30 = arith.constant 0 : index
    %45 = vector.load %arg8[%c0_28, %c0_29, %c0_30] : memref<2x4x128xf32, #tpu.memory_space<vmem>>, vector<1x4x128xf32>
    %46 = vector.shape_cast %45 : vector<1x4x128xf32> to vector<4x128xf32>
    %47 = vector.shape_cast %44 : vector<4x128xf32> to vector<1x4x128xf32>
    tpu.vector_store %arg8[%c0_28, %c0_29, %c0_30], %47 {strides = array<i32>} : memref<2x4x128xf32, #tpu.memory_space<vmem>>, vector<1x4x128xf32>,
    %c1 = arith.constant 1 : index
    %c0_31 = arith.constant 0 : index
    %c0_32 = arith.constant 0 : index
    %48 = vector.load %arg6[%c1, %c0_31, %c0_32] : memref<2x4x128xf32, #tpu.memory_space<vmem>>, vector<1x4x128xf32>
    %49 = vector.shape_cast %48 : vector<1x4x128xf32> to vector<4x128xf32>
    %50 = vector.extract_strided_slice %20 {offsets = [1, 0, 0], sizes = [1, 4, 128], strides = [1, 1, 1]} : vector<2x4x128xf32> to vector<1x4x128xf32>
    %51 = vector.shape_cast %50 : vector<1x4x128xf32> to vector<4x128xf32>
    %cst_33 = arith.constant dense<0.000000e+00> : vector<4x128xf32>
    %52 = tpu.matmul %51, %3, %cst_33 {dimension_numbers = #tpu.dot_dimension_numbers<[1], [0], [0], [1], [0, 0, 1, 1], [], []>} : vector<4x128xf32>, vector<128x128xf32>, vector<4x128xf32> -> vector<4x128xf32>
    %53 = arith.addf %49, %52 : vector<4x128xf32>
    %c1_34 = arith.constant 1 : index
    %c0_35 = arith.constant 0 : index
    %c0_36 = arith.constant 0 : index
    %54 = vector.load %arg6[%c1_34, %c0_35, %c0_36] : memref<2x4x128xf32, #tpu.memory_space<vmem>>, vector<1x4x128xf32>
    %55 = vector.shape_cast %54 : vector<1x4x128xf32> to vector<4x128xf32>
    %56 = vector.shape_cast %53 : vector<4x128xf32> to vector<1x4x128xf32>
    tpu.vector_store %arg6[%c1_34, %c0_35, %c0_36], %56 {strides = array<i32>} : memref<2x4x128xf32, #tpu.memory_space<vmem>>, vector<1x4x128xf32>,
    %c1_37 = arith.constant 1 : index
    %c0_38 = arith.constant 0 : index
    %c0_39 = arith.constant 0 : index
    %57 = vector.load %arg7[%c1_37, %c0_38, %c0_39] : memref<2x4x128xf32, #tpu.memory_space<vmem>>, vector<1x4x128xf32>
    %58 = vector.shape_cast %57 : vector<1x4x128xf32> to vector<4x128xf32>
    %59 = vector.extract_strided_slice %18 {offsets = [1, 0, 0], sizes = [1, 4, 128], strides = [1, 1, 1]} : vector<2x4x128xf32> to vector<1x4x128xf32>
    %60 = vector.shape_cast %59 : vector<1x4x128xf32> to vector<4x128xf32>
    %cst_40 = arith.constant dense<0.000000e+00> : vector<4x128xf32>
    %61 = tpu.matmul %60, %3, %cst_40 {dimension_numbers = #tpu.dot_dimension_numbers<[1], [0], [0], [1], [0, 0, 1, 1], [], []>} : vector<4x128xf32>, vector<128x128xf32>, vector<4x128xf32> -> vector<4x128xf32>
    %62 = arith.addf %58, %61 : vector<4x128xf32>
    %c1_41 = arith.constant 1 : index
    %c0_42 = arith.constant 0 : index
    %c0_43 = arith.constant 0 : index
    %63 = vector.load %arg7[%c1_41, %c0_42, %c0_43] : memref<2x4x128xf32, #tpu.memory_space<vmem>>, vector<1x4x128xf32>
    %64 = vector.shape_cast %63 : vector<1x4x128xf32> to vector<4x128xf32>
    %65 = vector.shape_cast %62 : vector<4x128xf32> to vector<1x4x128xf32>
    tpu.vector_store %arg7[%c1_41, %c0_42, %c0_43], %65 {strides = array<i32>} : memref<2x4x128xf32, #tpu.memory_space<vmem>>, vector<1x4x128xf32>,
    %c1_44 = arith.constant 1 : index
    %c0_45 = arith.constant 0 : index
    %c0_46 = arith.constant 0 : index
    %66 = vector.load %arg8[%c1_44, %c0_45, %c0_46] : memref<2x4x128xf32, #tpu.memory_space<vmem>>, vector<1x4x128xf32>
    %67 = vector.shape_cast %66 : vector<1x4x128xf32> to vector<4x128xf32>
    %68 = vector.extract_strided_slice %19 {offsets = [1, 0, 0], sizes = [1, 4, 128], strides = [1, 1, 1]} : vector<2x4x128xf32> to vector<1x4x128xf32>
    %69 = vector.shape_cast %68 : vector<1x4x128xf32> to vector<4x128xf32>
    %cst_47 = arith.constant dense<0.000000e+00> : vector<4x128xf32>
    %70 = tpu.matmul %69, %3, %cst_47 {dimension_numbers = #tpu.dot_dimension_numbers<[1], [0], [0], [1], [0, 0, 1, 1], [], []>} : vector<4x128xf32>, vector<128x128xf32>, vector<4x128xf32> -> vector<4x128xf32>
    %71 = arith.addf %67, %70 : vector<4x128xf32>
    %c1_48 = arith.constant 1 : index
    %c0_49 = arith.constant 0 : index
    %c0_50 = arith.constant 0 : index
    %72 = vector.load %arg8[%c1_48, %c0_49, %c0_50] : memref<2x4x128xf32, #tpu.memory_space<vmem>>, vector<1x4x128xf32>
    %73 = vector.shape_cast %72 : vector<1x4x128xf32> to vector<4x128xf32>
    %74 = vector.shape_cast %71 : vector<4x128xf32> to vector<1x4x128xf32>
    tpu.vector_store %arg8[%c1_48, %c0_49, %c0_50], %74 {strides = array<i32>} : memref<2x4x128xf32, #tpu.memory_space<vmem>>, vector<1x4x128xf32>,
    %c0_i32_51 = arith.constant 0 : i32
    %75 = arith.cmpi eq, %arg1, %c0_i32_51 : i32
    %76 = arith.extui %75 : i1 to i32
    %c0_i32_52 = arith.constant 0 : i32
    %77 = arith.cmpi ne, %76, %c0_i32_52 : i32
    scf.if %77 {
      %c0_53 = arith.constant 0 : index
      %c0_54 = arith.constant 0 : index
      %c0_55 = arith.constant 0 : index
      %78 = vector.load %arg6[%c0_53, %c0_54, %c0_55] : memref<2x4x128xf32, #tpu.memory_space<vmem>>, vector<2x4x128xf32>
      %cst_56 = arith.constant dense<0xFF800000> : vector<2x4xf32>
      %79 = vector.multi_reduction <maximumf>, %78, %cst_56 [2] : vector<2x4x128xf32> to vector<2x4xf32>
      %c0_57 = arith.constant 0 : index
      %c0_58 = arith.constant 0 : index
      %c0_59 = arith.constant 0 : index
      %80 = vector.load %arg7[%c0_57, %c0_58, %c0_59] : memref<2x4x128xf32, #tpu.memory_space<vmem>>, vector<2x4x128xf32>
      %cst_60 = arith.constant dense<0xFF800000> : vector<2x4xf32>
      %81 = vector.multi_reduction <maximumf>, %80, %cst_60 [2] : vector<2x4x128xf32> to vector<2x4xf32>
      %c0_61 = arith.constant 0 : index
      %c0_62 = arith.constant 0 : index
      %c0_63 = arith.constant 0 : index
      %82 = vector.load %arg8[%c0_61, %c0_62, %c0_63] : memref<2x4x128xf32, #tpu.memory_space<vmem>>, vector<2x4x128xf32>
      %cst_64 = arith.constant dense<0xFF800000> : vector<2x4xf32>
      %83 = vector.multi_reduction <maximumf>, %82, %cst_64 [2] : vector<2x4x128xf32> to vector<2x4xf32>
      %c0_65 = arith.constant 0 : index
      %c0_66 = arith.constant 0 : index
      %c0_67 = arith.constant 0 : index
      %84 = vector.load %arg4[%c0_65, %c0_66, %c0_67] : memref<1x2x4xf32, #tpu.memory_space<vmem>>, vector<1x2x4xf32>
      %85 = vector.shape_cast %84 : vector<1x2x4xf32> to vector<2x4xf32>
      %86 = vector.shape_cast %79 : vector<2x4xf32> to vector<1x2x4xf32>
      tpu.vector_store %arg4[%c0_65, %c0_66, %c0_67], %86 {strides = array<i32>} : memref<1x2x4xf32, #tpu.memory_space<vmem>>, vector<1x2x4xf32>,
      %87 = arith.addf %81, %83 : vector<2x4xf32>
      %88 = arith.subf %87, %79 : vector<2x4xf32>
      %c0_68 = arith.constant 0 : index
      %c0_69 = arith.constant 0 : index
      %c0_70 = arith.constant 0 : index
      %89 = vector.load %arg5[%c0_68, %c0_69, %c0_70] : memref<1x2x4xf32, #tpu.memory_space<vmem>>, vector<1x2x4xf32>
      %90 = vector.shape_cast %89 : vector<1x2x4xf32> to vector<2x4xf32>
      %91 = vector.shape_cast %88 : vector<2x4xf32> to vector<1x2x4xf32>
      tpu.vector_store %arg5[%c0_68, %c0_69, %c0_70], %91 {strides = array<i32>} : memref<1x2x4xf32, #tpu.memory_space<vmem>>, vector<1x2x4xf32>,
    } else {
    }
    return
  }
  func.func @transform_0(%arg0: i32, %arg1: i32) -> (i32, i32, i32) {
    %c1_i32 = arith.constant 1 : i32
    %0 = arith.muli %arg0, %c1_i32 : i32
    %1 = arith.addi %0, %arg1 : i32
    %c0_i32 = arith.constant 0 : i32
    %c0_i32_0 = arith.constant 0 : i32
    %c0_i32_1 = arith.constant 0 : i32
    return %c0_i32, %c0_i32_0, %1 : i32, i32, i32
  }
  func.func @transform_1(%arg0: i32, %arg1: i32) -> (i32, i32, i32) {
    %c1_i32 = arith.constant 1 : i32
    %0 = arith.muli %arg0, %c1_i32 : i32
    %1 = arith.addi %0, %arg1 : i32
    %c0_i32 = arith.constant 0 : i32
    %c0_i32_0 = arith.constant 0 : i32
    %c0_i32_1 = arith.constant 0 : i32
    return %c0_i32, %c0_i32_0, %1 : i32, i32, i32
  }
  func.func @transform_2(%arg0: i32, %arg1: i32) -> (i32, i32, i32) {
    %c0_i32 = arith.constant 0 : i32
    %c0_i32_0 = arith.constant 0 : i32
    %c0_i32_1 = arith.constant 0 : i32
    return %arg0, %c0_i32, %c0_i32_0 : i32, i32, i32
  }
  func.func @transform_3(%arg0: i32, %arg1: i32) -> (i32, i32, i32) {
    %c0_i32 = arith.constant 0 : i32
    %c0_i32_0 = arith.constant 0 : i32
    %c0_i32_1 = arith.constant 0 : i32
    return %arg0, %c0_i32, %c0_i32_0 : i32, i32, i32
  }
}

</mosaic_0001>

<bundles_post_ra>
// kernel: tpu_custom_call.1
= control target key start
LH: loop header
LB: loop body
LE: loop exit
PB: predicated region body
PF: predicated region fallthrough
CT: control target
= control target key end

     0   :  { %9 = vsyncpa [#allocation7], 0  ;;  %s2147_s0 = inlined_call_operand.hbm [shape: f32[2,4,256], index: 0, kind: input, shape index: {}]   ;;  %s2148_s1 = inlined_call_operand.hbm [shape: f32[2,4,256], index: 1, kind: input, shape index: {}]   ;;  %s2149_s2 = inlined_call_operand.hbm [shape: f32[2,2,4], index: 2, kind: output, shape index: {0}]   ;;  %s2150_s3 = inlined_call_operand.hbm [shape: f32[2,2,4], index: 3, kind: output, shape index: {1}]  }
   0x1   :  { %11 = vsyncpa [#allocation7 + $0x1], 0 }
   0x2   :  { %12 = vsyncpa [#allocation10], 0 }
   0x3   :  { %14 = vsyncpa [#allocation10 + $0x1], 0 }
   0x4   :  { %15 = vsyncpa [#allocation8], 0 }
   0x5   :  { %17 = vsyncpa [#allocation8 + $0x1], 0 }
   0x6   :  { %18 = vsyncpa [#allocation13], 0 }
   0x7   :  { %20 = vsyncpa [#allocation13 + $0x1], 0  ;;  %s1745_s12 = smov 0   ;;  %s1747_s13 = smov 0  }
   0x8   :  { %s1749_s14 = smov 0   ;;  %s1751_s15 = smov 0  }
   0x9   :  { %s1753_s16 = smov 0   ;;  %s1755_s17 = smov 0  }
   0xa LB: > { %s1020_s18 = sadd.s32 4294967295, %s1712_s17   ;;  %s1021_s19 = sadd.s32 4294967294, %s1712_s17   ;;  %s1712_s17 = sphi %s1755_s17, %s26_s17   ;;  %s1708_s16 = sphi %s1753_s16, %s2169_s16   ;;  %s1704_s15 = sphi %s1751_s15, %s2168_s15   ;;  %s1700_s14 = sphi %s1749_s14, %s2167_s14   ;;  %s1696_s13 = sphi %s1747_s13, %s2166_s13   ;;  %s1692_s12 = sphi %s1745_s12, %s2165_s12  }
   0xb   : > { %s38_s20 = sadd.s32 1, %s1708_s16  ;;  %s47_s21 = sadd.s32 1, %s1700_s14 }
   0xc   : > { %p40_p0 = scmp.ge.s32.totalorder %s38_s20, 2  ;;  %p54_p1 = scmp.ne.s32.totalorder %s1700_s14, %s1696_s13 }
   0xd   : > { %p55_p2 = scmp.eq.s32.totalorder %s1712_s17, 0  ;;  %p60_p3 = scmp.ne.s32.totalorder %s1696_s13, %s1692_s12 }
   0xe   : > { %s2171_s20 = smov (%p40_p0, %s38_s20), 0  ;;  %p61_p5 = scmp.eq.s32.totalorder %s1020_s18, 0 }
   0xf   : > { %p1786_p4 = por %p55_p2, %p54_p1  ;;  %s44_s23 = ssub.s32 %s1708_s16, %s2171_s20 }
  0x10   : > { %p112_p6 = scmp.eq.s32.totalorder %s1020_s18, 1  ;;  %p45_p7 = scmp.eq.s32.totalorder %s44_s23, 0 }
  0x11   : > { %p1792_p8 = por %p61_p5, %p60_p3  ;;  %p118_p10 = scmp.eq.s32.totalorder %s1021_s19, 1 }
  0x12   : > { %p1796_p9 = por %p112_p6, %p54_p1  ;;  %p1469_p13 = scmp.lt.s32.totalorder %s1712_s17, 2 }
  0x13   : > { %s2155_s24 = scalar_select %p1792_p8, 1, 0 }
  0x14   : > { %s2156_s25 = scalar_select %p1796_p9, 1, 0 }
  0x15   : > { %s1801_s26 = scalar_select %p45_p7, %s1700_s14, %s47_s21  }
  0x16   : > { %p1803_p11 = por %p118_p10, %p60_p3  ;;  %s1810_s28 = sand.u32 1, %s1700_s14  }
  0x17   : > { %s1024_s29 = sshll.u32 %s1810_s28, 3  ;;  %s1025_s30 = sshll.u32 %s1708_s16, 6 }
  0x18   : > { %s2157_s27 = scalar_select %p1803_p11, 1, 0 }
  0x19   : > { %s1819_s6 = scalar_lea.hbm %s2147_s0, %s1025_s30  ;;  %s168_s7 = scalar_lea.vmem [#allocation6], %s1024_s29 }
  0x1a   : > { %s175_s8 = sshll.u32 %s168_s7, 4  ;;  %p1827_p0 = pnand %p1469_p13, %p1786_p4  ;;  %s1823_s8 = int_to_ptr.vmem [resolvable:$true] %s175_s8 }
  0x1b   : > { %s165_s10 = scalar_lea.sflag [#allocation7], %s1810_s28  ;;  %s1534_s11 = scalar_lea.hbm %s1819_s6, 128 }
  0x1c   : > { %p1535_p1 = scmp.ne.s32.totalorder %s1819_s6, %s1534_s11  ;;  %p1536_p2 = pneg %p1827_p0 }
  0x1d   : > { %s1539_s21 = scalar_lea.hbm %s2147_s0, 256  ;;  %p1540_p4 = scmp.lt.u32.totalorder %s1819_s6, %s2147_s0 }
  0x1e   : > { %p1537_p3 = pnand %p1536_p2, %p1535_p1  ;;  %p1541_p6 = scmp.lt.u32.totalorder %s1539_s21, %s1534_s11 }
  0x1f   : > { %p1543_p10 = scmp.lt.u32.totalorder %s1534_s11, %s1819_s6 }
  0x20   : > { %p1538_p5 = pneg %p1537_p3  ;;  %p1542_p7 = por %p1541_p6, %p1540_p4 }
  0x22   : > { %p1544_p13 = por %p1543_p10, %p1542_p7 }
  0x24   : > { %p1545_p12 = pnand %p1544_p13, %p1538_p5 }
  0x26   : > { %1548 = shalt.err (!%p1545_p12)
}
  0x27   : > { %s1549_s4 = scalar_lea.vmem %s1823_s8, 128  ;;  %s1714_s5 = smov [#allocation6]  }
  0x28   : > { %p1550_p1 = scmp.ne.s32.totalorder %s1823_s8, %s1549_s4  ;;  %s1554_s7 = sshll.u32 %s1714_s5, 4  ;;  %s1555_s7 = int_to_ptr.vmem [resolvable:$false] %s1554_s7 }
  0x29   : > { %s1556_s18 = scalar_lea.vmem %s1555_s7, 256  ;;  %p1557_p9 = scmp.lt.s32.totalorder %s1823_s8, %s1555_s7 }
  0x2a   : > { %p1552_p3 = pnand %p1550_p1, %p1536_p2  ;;  %p1558_p4 = scmp.lt.s32.totalorder %s1556_s18, %s1549_s4 }
  0x2c   : > { %p1553_p11 = pneg %p1552_p3  ;;  %p1559_p6 = por %p1558_p4, %p1557_p9 }
  0x2e   : > { %p1560_p7 = pnand %p1559_p6, %p1553_p11 }
  0x30   : > { %1563 = shalt.err (!%p1560_p7)
}
  0x31   : > { %s2152_s11 = smov 128   ;;  %s1716_s19 = smov 64  }
  0x32   : > { %s1717_s21 = smov 4   ;;  %p1028_p9 = scmp.ge.s32.totalorder %s1712_s17, 1 }
  0x33   : > { %1458 = dma.hbm_to_vmem [thread:$0]  (!%p1827_p0), %s1819_s6, 128, %s1823_s8, %s165_s10, %s2152_s11, %s1716_s19, %s1717_s21  }
  0x34   : > { %p204_p11 = scmp.lt.s32.totalorder %s1712_s17, 3  ;;  %s1873_s5 = scalar_lea.hbm %s2148_s1, %s1025_s30 }
  0x35   : > { %s189_s7 = scalar_lea.vmem [#allocation9], %s1024_s29  ;;  %s186_s6 = scalar_lea.sflag [#allocation10], %s1810_s28 }
  0x36   : > { %p1864_p12 = pnand %p1028_p9, %p204_p11  ;;  %s196_s18 = sshll.u32 %s189_s7, 4  ;;  %s1877_s18 = int_to_ptr.vmem [resolvable:$true] %s196_s18 }
  0x37   : > { %s1564_s8 = scalar_lea.hbm %s1873_s5, 128  ;;  %s1569_s30 = scalar_lea.hbm %s2148_s1, 256 }
  0x38   : > { %p1565_p5 = scmp.ne.s32.totalorder %s1873_s5, %s1564_s8  ;;  %p1570_p1 = scmp.lt.u32.totalorder %s1873_s5, %s2148_s1 }
  0x39   : > { %p1571_p3 = scmp.lt.u32.totalorder %s1569_s30, %s1564_s8  ;;  %p1573_p6 = scmp.lt.u32.totalorder %s1564_s8, %s1873_s5 }
  0x3a   : > { %p1567_p10 = pnand %p1565_p5, %p1536_p2 }
  0x3b   : > { %p1572_p4 = por %p1571_p3, %p1570_p1 }
  0x3c   : > { %p1568_p13 = pneg %p1567_p10 }
  0x3d   : > { %p1574_p7 = por %p1573_p6, %p1572_p4 }
  0x3f   : > { %p1575_p9 = pnand %p1574_p7, %p1568_p13 }
  0x41   : > { %1578 = shalt.err (!%p1575_p9)
}
  0x42   : > { %s1579_s29 = scalar_lea.vmem %s1877_s18, 128  ;;  %s1718_s7 = smov [#allocation9]  }
  0x43   : > { %p1580_p11 = scmp.ne.s32.totalorder %s1877_s18, %s1579_s29  ;;  %s1584_s10 = sshll.u32 %s1718_s7, 4  ;;  %s1585_s10 = int_to_ptr.vmem [resolvable:$false] %s1584_s10 }
  0x44   : > { %s1586_s11 = scalar_lea.vmem %s1585_s10, 256  ;;  %p1587_p8 = scmp.lt.s32.totalorder %s1877_s18, %s1585_s10 }
  0x45   : > { %p1582_p5 = pnand %p1580_p11, %p1536_p2  ;;  %p1588_p1 = scmp.lt.s32.totalorder %s1586_s11, %s1579_s29 }
  0x47   : > { %p1583_p10 = pneg %p1582_p5  ;;  %p1589_p3 = por %p1588_p1, %p1587_p8 }
  0x49   : > { %p1590_p4 = pnand %p1589_p3, %p1583_p10 }
  0x4b   : > { %1593 = shalt.err (!%p1590_p4)
}
  0x4c   : > { %s2160_s8 = smov 128   ;;  %208 = sbr.rel (%p1864_p12) target bundleno = 626 (0x272), region = 28 }
  0x4d   : > { %1461 = dma.hbm_to_vmem [thread:$0]  (!%p1827_p0), %s1873_s5, 128, %s1877_s18, %s186_s6, %s2160_s8, %s1716_s19, %s1717_s21  }
  0x4e   : > { %s1911_s23 = sand.u32 (!%p1864_p12), 1, %s1696_s13   ;;  %p2161_p8 = scmp.ne.s32.totalorder (!%p1864_p12), %s2155_s24, 0 }
  0x4f   : > { %s1029_s30 = sshll.u32 (!%p1864_p12), %s1911_s23, 3  ;;  %s211_s4 = scalar_lea.sflag (!%p1864_p12), [#allocation7], %s1911_s23 }
  0x50   : > { %s1915_s9 = scalar_lea.vmem (!%p1864_p12), [#allocation6], %s1029_s30 }
  0x53   : > { %1675 = dma.done.wait (%p2161_p8), %s211_s4, 128  }
  0x54   : > { %1677 = vsyncadd (%p2161_p8), %s211_s4, 4294967168  ;;  %s220_s28 = scalar_lea.sflag [#allocation10], %s1911_s23  ;;  %s1922_s19 = scalar_lea.vmem [#allocation9], %s1029_s30 }
  0x55   : > { %1679 = dma.done.wait (%p2161_p8), %s220_s28, 128  }
  0x56   : > { %1681 = vsyncadd (%p2161_p8), %s220_s28, 4294967168  ;;  %v1719_v0 = vmov 0.0|0.0   ;;  %v1720_v1 = vmov 0.0   ;;  %v1721_v2 = vmov 1.0|1.0   ;;  %vm1722_vm0 = vmmov 0  }
  0x57   : > { %1367 = vmatprep.subr.bf16.mxu1 %v1719_v0  ;;  %1351 = vmatprep.subr.bf16.mxu0 %v1719_v0  ;;  %262 = vst [vmem:[#allocation2] sm:$0xf] %v1720_v1  ;;  %263 = vst [vmem:[#allocation2 + $0x4] sm:$0xf] %v1720_v1  ;;  %vm302_vm1 = vcmask 1043456   ;;  %s1031_s24 = sshll.u32 %s1911_s23, 1 }
  0x58   : > { %264 = vst [vmem:[#allocation3] sm:$0xf] %v1720_v1  ;;  %265 = vst [vmem:[#allocation3 + $0x4] sm:$0xf] %v1720_v1  ;;  %1368 = vmatpush3.bf16.msra.mxu1 %v1721_v2  ;;  %1352 = vmatpush3.bf16.msra.mxu0 %v1721_v2  ;;  %v300_v3 = vld [vmem:[%s1915_s9] sm:$0xf] }
  0x59   : > { %266 = vst [vmem:[#allocation4] sm:$0xf] %v1720_v1  ;;  %267 = vst [vmem:[#allocation4 + $0x4] sm:$0xf] %v1720_v1  ;;  %1369 = vmatprep.subr.bf16.mxu1 %v1719_v0  ;;  %1353 = vmatprep.subr.bf16.mxu0 %v1719_v0  ;;  %v301_v4 = vld [vmem:[%s1915_s9 + $0x4] sm:$0xf] }
  0x5a   : > { %1208 = vmatprep.mubr.msk.f32.mxu1 %vm1722_vm0, %v1720_v1  ;;  %1173 = vmatprep.mubr.msk.f32.mxu0 %vm1722_vm0, %v1720_v1  ;;  %v303_v5 = vsel %vm302_vm1, %v300_v3, -inf  ;;  %v310_v6 = vsel %vm302_vm1, %v301_v4, -inf  ;;  %v347_v43 = vld [vmem:[%s1922_s19] sm:$0xf]  ;;  %v348_v51 = vld [vmem:[%s1922_s19 + $0x4] sm:$0xf] }
  0x5b   : > { %v304_v7 = vrot.slane %v303_v5, 4  ;;  %v311_v8 = vrot.slane %v310_v6, 4  ;;  %s1035_s21 = sshll.u32 %s1704_s15, 5  ;;  %s248_s22 = scalar_lea.vmem [#allocation11], %s1031_s24  ;;  %vm831_vm2 = vcmask 1041409   ;;  %vm834_vm3 = vcmask 25600  }
  0x5c   : > { %1370 = vmatpush3.bf16.msra.mxu1 %v1721_v2  ;;  %1354 = vmatpush3.bf16.msra.mxu0 %v1721_v2  ;;  %s872_s5 = sshll.u32 %s248_s22, 4  ;;  %s2058_s18 = scalar_lea.vmem [#allocation12], %s1031_s24  ;;  %s2066_s5 = int_to_ptr.vmem [resolvable:$true] %s872_s5 }
  0x5d   : > { %1371 = vmatprep.subr.bf16.mxu1 %v1719_v0  ;;  %1355 = vmatprep.subr.bf16.mxu0 %v1719_v0  ;;  %v305_v9 = vmax.f32 %v303_v5, %v304_v7  ;;  %v312_v10 = vmax.f32 %v310_v6, %v311_v8  ;;  %s885_s6 = sshll.u32 %s2058_s18, 4  ;;  %s2064_s10 = scalar_lea.hbm %s2149_s2, %s1035_s21  ;;  %s2075_s6 = int_to_ptr.vmem [resolvable:$true] %s885_s6 }
  0x5e   : > { %v351_v55 = vld [vmem:[#allocation2] sm:$0xf]  ;;  %v571_v63 = vld [vmem:[#allocation2 + $0x4] sm:$0xf]  ;;  %s2073_s8 = scalar_lea.hbm %s2150_s3, %s1035_s21  ;;  %s854_s30 = scalar_lea.sflag [#allocation8], %s1911_s23 }
  0x5f   : > { %v306_v11 = vrot.slane %v305_v9, 2  ;;  %v313_v12 = vrot.slane %v312_v10, 2  ;;  %v424_v53 = vld [vmem:[#allocation3] sm:$0xf]  ;;  %s1594_s4 = scalar_lea.vmem %s2066_s5, 32  ;;  %p2162_p2 = scmp.ne.s32.totalorder %s2156_s25, 0 }
  0x60   : > { %1372 = vmatpush3.bf16.msra.mxu1 %v1721_v2  ;;  %1356 = vmatpush3.bf16.msra.mxu0 %v1721_v2  ;;  %p1595_p0 = scmp.ne.s32.totalorder %s2066_s5, %s1594_s4  ;;  %s1723_s9 = smov [#allocation11]  }
  0x61   : > { %1373 = vmatprep.subr.bf16.mxu1 %v1719_v0  ;;  %1357 = vmatprep.subr.bf16.mxu0 %v1719_v0  ;;  %v307_v13 = vmax.f32 %v305_v9, %v306_v11  ;;  %v314_v14 = vmax.f32 %v312_v10, %v313_v12  ;;  %v719_v9 = vld [vmem:[#allocation4 + $0x4] sm:$0xf]  ;;  %v645_v11 = vld [vmem:[#allocation3 + $0x4] sm:$0xf]  ;;  %s1598_s28 = sshll.u32 %s1723_s9, 4  ;;  %s1599_s28 = int_to_ptr.vmem [resolvable:$false] %s1598_s28 }
  0x62   : > { %p1596_p12 = pnand %p1595_p0, %p2162_p2  ;;  %s1600_s19 = scalar_lea.vmem %s1599_s28, 64 }
  0x63   : > { %v308_v15 = vrot.slane %v307_v13, 1  ;;  %v315_v16 = vrot.slane %v314_v14, 1  ;;  %p1601_p6 = scmp.lt.s32.totalorder %s2066_s5, %s1599_s28  ;;  %p1602_p7 = scmp.lt.s32.totalorder %s1600_s19, %s1594_s4 }
  0x64   : > { %1374 = vmatpush3.bf16.msra.mxu1 %v1721_v2  ;;  %1358 = vmatpush3.bf16.msra.mxu0 %v1721_v2  ;;  %p1597_p13 = pneg %p1596_p12 }
  0x65   : > { %1375 = vmatprep.subr.bf16.mxu1 %v1719_v0  ;;  %1359 = vmatprep.subr.bf16.mxu0 %v1719_v0  ;;  %v309_v17 = vmax.f32 %v307_v13, %v308_v15  ;;  %v316_v18 = vmax.f32 %v314_v14, %v315_v16  ;;  %p1603_p9 = por %p1602_p7, %p1601_p6 }
  0x67   : > { %v317_v19 = vsub.f32 %v300_v3, %v309_v17  ;;  %v318_v20 = vsub.f32 %v301_v4, %v316_v18  ;;  %p1604_p11 = pnand %p1603_p9, %p1597_p13 }
  0x68   : > { %1376 = vmatpush3.bf16.msra.mxu1 %v1721_v2  ;;  %1360 = vmatpush3.bf16.msra.mxu0 %v1721_v2 }
  0x69   : > { %1377 = vmatprep.subr.bf16.mxu1 %v1719_v0  ;;  %1361 = vmatprep.subr.bf16.mxu0 %v1719_v0  ;;  %v319_v21 = vmul.f32 1.442695, %v317_v19  ;;  %v321_v22 = vmul.f32 1.442695, %v318_v20 }
  0x6b   : > { %1526 = vpow2.f32 %v319_v21 }
  0x6c   : > { %1378 = vmatpush3.bf16.msra.mxu1 %v1721_v2  ;;  %1362 = vmatpush3.bf16.msra.mxu0 %v1721_v2  ;;  %1528 = vpow2.f32 %v321_v22 }
  0x6d   : > { %1379 = vmatprep.subr.bf16.mxu1 %v1719_v0  ;;  %1363 = vmatprep.subr.bf16.mxu0 %v1719_v0 }
  0x70   : > { %1380 = vmatpush3.bf16.msra.mxu1 %v1721_v2  ;;  %1364 = vmatpush3.bf16.msra.mxu0 %v1721_v2 }
  0x71   : > { %1381 = vmatprep.subr.bf16.mxu1 %v1719_v0  ;;  %1365 = vmatprep.subr.bf16.mxu0 %v1719_v0 }
  0x74   : > { %1382 = vmatpush3.bf16.msra.mxu1 %v1721_v2  ;;  %1366 = vmatpush3.bf16.msra.mxu0 %v1721_v2 }
  0x75   : > { %1399 = vmatprep.subr.bf16.mxu1 %v1719_v0  ;;  %1383 = vmatprep.subr.bf16.mxu0 %v1719_v0  ;;  %v1527_v23 = vpop.eup %1526 }
  0x76   : > { %v323_v24 = vsel %vm302_vm1, %v1527_v23, 0.0  ;;  %v1529_v25 = vpop.eup %1528 }
  0x77   : > { %v324_v26 = vrot.slane %v323_v24, 4  ;;  %v330_v28 = vsel %vm302_vm1, %v1529_v25, 0.0 }
  0x78   : > { %v331_v31 = vrot.slane %v330_v28, 4 }
  0x79   : > { %v325_v27 = vadd.f32 %v324_v26, %v323_v24 }
  0x7a   : > { %v332_v34 = vadd.f32 %v331_v31, %v330_v28 }
  0x7b   : > { %v326_v29 = vrot.slane %v325_v27, 2 }
  0x7c   : > { %v333_v35 = vrot.slane %v332_v34, 2 }
  0x7d   : > { %v327_v30 = vadd.f32 %v326_v29, %v325_v27 }
  0x7e   : > { %v334_v36 = vadd.f32 %v333_v35, %v332_v34 }
  0x7f   : > { %v328_v32 = vrot.slane %v327_v30, 1 }
  0x80   : > { %v335_v38 = vrot.slane %v334_v36, 1 }
  0x81   : > { %v329_v33 = vadd.f32 %v328_v32, %v327_v30 }
  0x82   : > { %v336_v41 = vadd.f32 %v335_v38, %v334_v36 }
  0x83   : > { %1530 = vrcp.f32 %v329_v33 }
  0x84   : > { %1532 = vrcp.f32 %v336_v41 }
  0x8d   : > { %v1531_v37 = vpop.eup %1530 }
  0x8e   : > { %v339_v39 = vmul.f32 %v1531_v37, %v329_v33  ;;  %v1533_v46 = vpop.eup %1532 }
  0x8f   : > { %v340_v47 = vmul.f32 %v1533_v46, %v336_v41 }
  0x90   : > { %v341_v40 = vsub.f32 2.0, %v339_v39 }
  0x91   : > { %v342_v48 = vsub.f32 2.0, %v340_v47 }
  0x92   : > { %v343_v42 = vmul.f32 %v1531_v37, %v341_v40 }
  0x93   : > { %v344_v49 = vmul.f32 %v1533_v46, %v342_v48 }
  0x94   : > { %v345_v44 = vmul.f32 %v1527_v23, %v343_v42 }
  0x95   : > { %v346_v50 = vmul.f32 %v1529_v25, %v344_v49  ;;  %v821_v25 = vlaneseq }
  0x96   : > { %1209 = vmatmul.mubr.f32.vlgmr.msra.gmra.mrb[0].mxu1 %v345_v44  ;;  %v349_v45 = vmul.f32 %v347_v43, %v345_v44 }
  0x97   : > { %1400 = vmatpush3.bf16.msra.mxu1 %v1721_v2  ;;  %1278 = vmatprep.mubr.msk.f32.mxu1 %vm1722_vm0, %v1720_v1  ;;  %v350_v52 = vmul.f32 %v348_v51, %v346_v50  ;;  %v822_v28 = vand.u32 127, %v821_v25  ;;  %v824_v29 = vshrl.u32 %v821_v25, 7 }
  0x98   : > { %1174 = vmatmul.mubr.f32.vlgmr.msra.gmra.mrb[0].mxu0 %v349_v45  ;;  %1401 = vmatprep.subr.bf16.mxu1 %v1719_v0 }
  0x99   : > { %1384 = vmatpush3.bf16.msra.mxu0 %v1721_v2  ;;  %1243 = vmatprep.mubr.msk.f32.mxu0 %vm1722_vm0, %v1720_v1  ;;  %v825_v33 = vsub.s32 %v822_v28, %v824_v29 }
  0x9a   : > { %1385 = vmatprep.subr.bf16.mxu0 %v1719_v0 }
  0x9b   : > { %1402 = vmatpush3.bf16.msra.mxu1 %v1721_v2 }
  0x9c   : > { %1403 = vmatprep.subr.bf16.mxu1 %v1719_v0 }
  0x9d   : > { %1386 = vmatpush3.bf16.msra.mxu0 %v1721_v2 }
  0x9e   : > { %1387 = vmatprep.subr.bf16.mxu0 %v1719_v0 }
  0x9f   : > { %1404 = vmatpush3.bf16.msra.mxu1 %v1721_v2 }
  0xa0   : > { %1405 = vmatprep.subr.bf16.mxu1 %v1719_v0 }
  0xa1   : > { %1388 = vmatpush3.bf16.msra.mxu0 %v1721_v2 }
  0xa2   : > { %1389 = vmatprep.subr.bf16.mxu0 %v1719_v0 }
  0xa3   : > { %1406 = vmatpush3.bf16.msra.mxu1 %v1721_v2 }
  0xa4   : > { %1407 = vmatprep.subr.bf16.mxu1 %v1719_v0 }
  0xa5   : > { %1390 = vmatpush3.bf16.msra.mxu0 %v1721_v2 }
  0xa6   : > { %1391 = vmatprep.subr.bf16.mxu0 %v1719_v0 }
  0xa7   : > { %1408 = vmatpush3.bf16.msra.mxu1 %v1721_v2 }
  0xa8   : > { %1409 = vmatprep.subr.bf16.mxu1 %v1719_v0 }
  0xa9   : > { %1392 = vmatpush3.bf16.msra.mxu0 %v1721_v2 }
  0xaa   : > { %1393 = vmatprep.subr.bf16.mxu0 %v1719_v0 }
  0xab   : > { %1410 = vmatpush3.bf16.msra.mxu1 %v1721_v2 }
  0xac   : > { %1411 = vmatprep.subr.bf16.mxu1 %v1719_v0 }
  0xad   : > { %1394 = vmatpush3.bf16.msra.mxu0 %v1721_v2 }
  0xae   : > { %1395 = vmatprep.subr.bf16.mxu0 %v1719_v0 }
  0xaf   : > { %1412 = vmatpush3.bf16.msra.mxu1 %v1721_v2 }
  0xb0   : > { %1413 = vmatprep.subr.bf16.mxu1 %v1719_v0 }
  0xb1   : > { %1396 = vmatpush3.bf16.msra.mxu0 %v1721_v2 }
  0xb2   : > { %1397 = vmatprep.subr.bf16.mxu0 %v1719_v0 }
  0xb3   : > { %1414 = vmatpush3.bf16.msra.mxu1 %v1721_v2 }
  0xb4   : > { %1431 = vmatprep.subr.bf16.mxu1 %v1719_v0 }
  0xb5   : > { %1398 = vmatpush3.bf16.msra.mxu0 %v1721_v2 }
  0xb6   : > { %1279 = vmatmul.mubr.f32.vlgmr.msra.gmra.mrb[2].mxu1 %v350_v52  ;;  %1415 = vmatprep.subr.bf16.mxu0 %v1719_v0 }
  0xb7   : > { %1432 = vmatpush3.bf16.msra.mxu1 %v1721_v2  ;;  %1348 = vmatprep.mubr.msk.f32.mxu1 %vm1722_vm0, %v1720_v1 }
  0xb8   : > { %1244 = vmatmul.mubr.f32.vlgmr.msra.gmra.mrb[2].mxu0 %v347_v43  ;;  %1433 = vmatprep.subr.bf16.mxu1 %v1719_v0 }
  0xb9   : > { %1416 = vmatpush3.bf16.msra.mxu0 %v1721_v2  ;;  %1313 = vmatprep.mubr.msk.f32.mxu0 %vm1722_vm0, %v1720_v1 }
  0xba   : > { %1417 = vmatprep.subr.bf16.mxu0 %v1719_v0 }
  0xbb   : > { %1434 = vmatpush3.bf16.msra.mxu1 %v1721_v2 }
  0xbc   : > { %1435 = vmatprep.subr.bf16.mxu1 %v1719_v0 }
  0xbd   : > { %1418 = vmatpush3.bf16.msra.mxu0 %v1721_v2 }
  0xbe   : > { %1419 = vmatprep.subr.bf16.mxu0 %v1719_v0 }
  0xbf   : > { %1436 = vmatpush3.bf16.msra.mxu1 %v1721_v2 }
  0xc0   : > { %1437 = vmatprep.subr.bf16.mxu1 %v1719_v0 }
  0xc1   : > { %1420 = vmatpush3.bf16.msra.mxu0 %v1721_v2 }
  0xc2   : > { %1421 = vmatprep.subr.bf16.mxu0 %v1719_v0 }
  0xc3   : > { %1438 = vmatpush3.bf16.msra.mxu1 %v1721_v2 }
  0xc4   : > { %1439 = vmatprep.subr.bf16.mxu1 %v1719_v0 }
  0xc5   : > { %1422 = vmatpush3.bf16.msra.mxu0 %v1721_v2 }
  0xc6   : > { %1423 = vmatprep.subr.bf16.mxu0 %v1719_v0 }
  0xc7   : > { %1440 = vmatpush3.bf16.msra.mxu1 %v1721_v2 }
  0xc8   : > { %1441 = vmatprep.subr.bf16.mxu1 %v1719_v0 }
  0xc9   : > { %1424 = vmatpush3.bf16.msra.mxu0 %v1721_v2 }
  0xca   : > { %1425 = vmatprep.subr.bf16.mxu0 %v1719_v0 }
  0xcb   : > { %1442 = vmatpush3.bf16.msra.mxu1 %v1721_v2 }
  0xcc   : > { %1443 = vmatprep.subr.bf16.mxu1 %v1719_v0 }
  0xcd   : > { %1426 = vmatpush3.bf16.msra.mxu0 %v1721_v2 }
  0xce   : > { %1427 = vmatprep.subr.bf16.mxu0 %v1719_v0 }
  0xcf   : > { %1444 = vmatpush3.bf16.msra.mxu1 %v1721_v2 }
  0xd0   : > { %1445 = vmatprep.subr.bf16.mxu1 %v1719_v0 }
  0xd1   : > { %1428 = vmatpush3.bf16.msra.mxu0 %v1721_v2 }
  0xd2   : > { %1429 = vmatprep.subr.bf16.mxu0 %v1719_v0  ;;  %v497_v0 = vld [vmem:[#allocation4] sm:$0xf] }
  0xd3   : > { %1446 = vmatpush3.bf16.msra.mxu1 %v1721_v2 }
  0xd5   : > { %1430 = vmatpush3.bf16.msra.mxu0 %v1721_v2 }
  0xd6   : > { %1349 = vmatmul.mubr.f32.vlgmr.msra.gmra.mrb[4].mxu1 %v348_v51 }
  0xd8   : > { %1314 = vmatmul.mubr.f32.vlgmr.msra.gmra.mrb[4].mxu0 %v346_v50 }
 0x169   : > { %v491_v54 = vpop.f32.mrb[0].mxu1 }
 0x16a   : > { %v495_v56 = vadd.f32 %v491_v54, %v424_v53  ;;  %v1210_v57 = vpop.f32.mrb[1].mxu1 }
 0x16b   : > { %v418_v58 = vpop.f32.mrb[0].mxu0 }
 0x16c   : > { %496 = vst [vmem:[#allocation3] sm:$0xf] %v495_v56  ;;  %v422_v59 = vadd.f32 %v418_v58, %v351_v55  ;;  %v1175_v60 = vpop.f32.mrb[1].mxu0 }
 0x16e   : > { %423 = vst [vmem:[#allocation2] sm:$0xf] %v422_v59 }
 0x173   : > { %v803_v61 = vld [vmem:[#allocation3] sm:$0xf] }
 0x174   : > { %v805_v62 = vsel %vm302_vm1, %v803_v61, -inf }
 0x175   : > { %806 = vmax.xlane.f32.xlu0 %v805_v62  ;;  %v795_v22 = vld [vmem:[#allocation2] sm:$0xf] }
 0x176   : > { %v797_v24 = vsel %vm302_vm1, %v795_v22, -inf }
 0x189   : > { %v638_v1 = vpop.f32.mrb[2].mxu1 }
 0x18a   : > { %v642_v2 = vadd.f32 %v638_v1, %v571_v63  ;;  %v1280_v3 = vpop.f32.mrb[3].mxu1 }
 0x18b   : > { %v564_v4 = vpop.f32.mrb[2].mxu0 }
 0x18c   : > { %v568_v5 = vadd.f32 %v564_v4, %v497_v0  ;;  %643 = vst [vmem:[#allocation2 + $0x4] sm:$0xf] %v642_v2  ;;  %v1245_v6 = vpop.f32.mrb[3].mxu0 }
 0x18e   : > { %569 = vst [vmem:[#allocation4] sm:$0xf] %v568_v5 }
 0x193   : > { %v796_v20 = vld [vmem:[#allocation2 + $0x4] sm:$0xf] }
 0x194   : > { %v800_v23 = vsel %vm302_vm1, %v796_v20, -inf }
 0x195   : > { %v811_v7 = vld [vmem:[#allocation4] sm:$0xf] }
 0x196   : > { %v813_v8 = vsel %vm302_vm1, %v811_v7, -inf }
 0x197   : > { %814 = vmax.xlane.f32.xlu1 %v813_v8 }
 0x1a9   : > { %v786_v10 = vpop.f32.mrb[4].mxu1 }
 0x1aa   : > { %v790_v12 = vadd.f32 %v786_v10, %v719_v9  ;;  %v1350_v13 = vpop.f32.mrb[5].mxu1 }
 0x1ab   : > { %v712_v14 = vpop.f32.mrb[4].mxu0 }
 0x1ac   : > { %791 = vst [vmem:[#allocation4 + $0x4] sm:$0xf] %v790_v12  ;;  %v716_v15 = vadd.f32 %v712_v14, %v645_v11  ;;  %v1315_v16 = vpop.f32.mrb[5].mxu0 }
 0x1ae   : > { %717 = vst [vmem:[#allocation3 + $0x4] sm:$0xf] %v716_v15 }
 0x1b3   : > { %v812_v17 = vld [vmem:[#allocation4 + $0x4] sm:$0xf] }
 0x1b4   : > { %v816_v18 = vsel %vm302_vm1, %v812_v17, -inf }
 0x1b5   : > { %817 = vmax.xlane.f32.xlu1 %v816_v18  ;;  %v804_v19 = vld [vmem:[#allocation3 + $0x4] sm:$0xf] }
 0x1b6   : > { %v808_v21 = vsel %vm302_vm1, %v804_v19, -inf }
 0x1b7   : > { %809 = vmax.xlane.f32.xlu0 %v808_v21 }
 0x1b9   : > { %801 = vmax.xlane.f32.xlu1 %v800_v23 }
 0x1bb   : > { %798 = vmax.xlane.f32.xlu0 %v797_v24 }
 0x202   : > { %v807_v27 = vpop.xlane.xlu0 %806 }
 0x224   : > { %v815_v26 = vpop.xlane.xlu1 %814 }
 0x225   : > { %v836_v35 = vadd.f32 %v815_v26, %v807_v27 }
 0x242   : > { %v818_v30 = vpop.xlane.xlu1 %817 }
 0x244   : > { %v810_v31 = vpop.xlane.xlu0 %809 }
 0x245   : > { %v837_v32 = vadd.f32 %v818_v30, %v810_v31 }
 0x246   : > { %v802_v34 = vpop.xlane.xlu1 %801 }
 0x247   : > { %v839_v36 = vsub.f32 %v837_v32, %v802_v34  ;;  %v830_v38 = vrot.slane %v802_v34, %v825_v33 }
 0x248   : > { %v799_v37 = vpop.xlane.xlu0 %798 }
 0x249   : > { %v826_v39 = vrot.slane %v799_v37, %v825_v33  ;;  %v838_v40 = vsub.f32 %v836_v35, %v799_v37  ;;  %v849_v41 = vrot.slane %v839_v36, %v825_v33 }
 0x24b   : > { %v832_v42 = vsel %vm831_vm2, %v830_v38, %v826_v39  ;;  %v845_v43 = vrot.slane %v838_v40, %v825_v33 }
 0x24c   : > { %835 = vst.msk [vmem:[%s248_s22] sm:$0x3] %vm834_vm3, %v832_v42 }
 0x24d   : > { %v850_v44 = vsel %vm831_vm2, %v849_v41, %v845_v43 }
 0x24e   : > { %1607 = shalt.err (!%p1604_p11)
}
 0x24f   : > { %s1608_s24 = scalar_lea.hbm %s2064_s10, 32  ;;  %s1612_s29 = scalar_lea.hbm %s2149_s2, 64 }
 0x250   : > { %p1609_p5 = scmp.ne.s32.totalorder %s2064_s10, %s1608_s24  ;;  %p1613_p3 = scmp.lt.u32.totalorder %s2064_s10, %s2149_s2 }
 0x251   : > { %p1614_p4 = scmp.lt.u32.totalorder %s1612_s29, %s1608_s24  ;;  %p1616_p0 = scmp.lt.u32.totalorder %s1608_s24, %s2064_s10 }
 0x252   : > { %p1610_p10 = pnand %p1609_p5, %p2162_p2 }
 0x253   : > { %p1615_p8 = por %p1614_p4, %p1613_p3 }
 0x254   : > { %p1611_p1 = pneg %p1610_p10 }
 0x255   : > { %p1617_p12 = por %p1616_p0, %p1615_p8 }
 0x257   : > { %p1618_p13 = pnand %p1617_p12, %p1611_p1 }
 0x259   : > { %1621 = shalt.err (!%p1618_p13)
}
 0x25a   : > { %1451 = dma.vmem_to_hbm [thread:$0]  (%p2162_p2), %s2066_s5, 32, %s2064_s10, %s854_s30   ;;  %852 = vst.msk [vmem:[%s2058_s18] sm:$0x3] %vm834_vm3, %v850_v44 }
 0x25b   : > { %s859_s11 = scalar_lea.sflag [#allocation13], %s1911_s23  ;;  %s1622_s4 = scalar_lea.vmem %s2075_s6, 32 }
 0x25c   : > { %p1623_p6 = scmp.ne.s32.totalorder %s2075_s6, %s1622_s4  ;;  %s1724_s9 = smov [#allocation12]  }
 0x25d   : > { %s1626_s28 = sshll.u32 %s1724_s9, 4  ;;  %s1627_s28 = int_to_ptr.vmem [resolvable:$false] %s1626_s28 }
 0x25e   : > { %p1624_p7 = pnand %p1623_p6, %p2162_p2  ;;  %s1628_s19 = scalar_lea.vmem %s1627_s28, 64 }
 0x25f   : > { %p1629_p11 = scmp.lt.s32.totalorder %s2075_s6, %s1627_s28  ;;  %p1630_p5 = scmp.lt.s32.totalorder %s1628_s19, %s1622_s4 }
 0x260   : > { %p1625_p9 = pneg %p1624_p7 }
 0x261   : > { %p1631_p10 = por %p1630_p5, %p1629_p11 }
 0x263   : > { %p1632_p1 = pnand %p1631_p10, %p1625_p9 }
 0x265   : > { %1635 = shalt.err (!%p1632_p1)
}
 0x266   : > { %s1636_s23 = scalar_lea.hbm %s2073_s8, 32  ;;  %s1640_s10 = scalar_lea.hbm %s2150_s3, 64 }
 0x267   : > { %p1637_p3 = scmp.ne.s32.totalorder %s2073_s8, %s1636_s23  ;;  %p1641_p0 = scmp.lt.u32.totalorder %s2073_s8, %s2150_s3 }
 0x268   : > { %p1642_p12 = scmp.lt.u32.totalorder %s1640_s10, %s1636_s23  ;;  %p1644_p6 = scmp.lt.u32.totalorder %s1636_s23, %s2073_s8 }
 0x269   : > { %p1638_p4 = pnand %p1637_p3, %p2162_p2 }
 0x26a   : > { %p1643_p13 = por %p1642_p12, %p1641_p0 }
 0x26b   : > { %p1639_p8 = pneg %p1638_p4 }
 0x26c   : > { %p1645_p7 = por %p1644_p6, %p1643_p13 }
 0x26e   : > { %p1646_p9 = pnand %p1645_p7, %p1639_p8 }
 0x270   : > { %1649 = shalt.err (!%p1646_p9)
}
 0x271   : > { %1452 = dma.vmem_to_hbm [thread:$0]  (%p2162_p2), %s2075_s6, 32, %s2073_s8, %s859_s11  }
 0x272 PF: > { %s897_s21 = sand.u32 1, %s1692_s12   ;;  %p2163_p11 = scmp.ne.s32.totalorder %s2157_s27, 0 }
 0x273   : > { %p2164_p5 = scmp.ge.s32.totalorder %s1712_s17, 2  ;;  %s898_s22 = scalar_lea.sflag [#allocation8], %s897_s21 }
 0x275   : > { %p1463_p10 = pnand %p2164_p5, %p2163_p11 }
 0x277   : > { %1683 = dma.done.wait (!%p1463_p10), %s898_s22, 32  }
 0x278   : > { %1685 = vsyncadd (!%p1463_p10), %s898_s22, 4294967264  ;;  %s907_s29 = scalar_lea.sflag [#allocation13], %s897_s21 }
 0x279   : > { %1687 = dma.done.wait (!%p1463_p10), %s907_s29, 32  }
 0x27a   : > { %1689 = vsyncadd (!%p1463_p10), %s907_s29, 4294967264  ;;  %s26_s17 = sadd.s32 1, %s1712_s17   ;;  %s2165_s12 = smov %s1696_s13 }
 0x27b   : > { %p23_p1 = scmp.ge.s32.totalorder %s26_s17, 4   ;;  %s2166_s13 = smov %s1700_s14 }
 0x27c   : > { %s2167_s14 = smov %s1801_s26  ;;  %s2168_s15 = smov %s1708_s16 }
 0x27d   : > { %s2169_s16 = smov %s2171_s20  ;;  %25 = sbr.rel (!%p23_p1) target bundleno = 10 (0xa), region = 114 }
 0x284   :  { %912 = vsyncpa [#allocation7], 1 }
 0x285   :  { %914 = vsyncpa [#allocation7 + $0x1], 1 }
 0x286   :  { %915 = vsyncpa [#allocation10], 1 }
 0x287   :  { %917 = vsyncpa [#allocation10 + $0x1], 1 }
 0x288   :  { %918 = vsyncpa [#allocation8], 1 }
 0x289   :  { %920 = vsyncpa [#allocation8 + $0x1], 1 }
 0x28a   :  { %921 = vsyncpa [#allocation13], 1 }
 0x28b   :  { %923 = vsyncpa [#allocation13 + $0x1], 1 }

</bundles_post_ra>
